<compile_context>
chip_gen: v7x
topology: tpu7x:2x2x1
jax: 0.10.0
libtpu: 0.0.40
codegen_flags: <defaults>
</compile_context>

<pallas_src>
import jax
import jax.numpy as jnp
from jax import lax
from jax.experimental import pallas as pl
from jax.experimental.pallas import tpu as pltpu

# q @ k^T style contraction: contract last dim of both operands.
_TRANS_B_DIMS = (((1,), (1,)), ((), ()))


def _amlp_kernel(x_ref, w1_ref, b1_ref, w2_ref, b2_ref, w3_ref, b3_ref, o_ref):
    cd = w1_ref.dtype                                   # MXU compute dtype
    x = x_ref[...].astype(cd)                           # [tb, I]  (natural layout)

    # Layer 1:  h1 = W1 @ x^T  (trans_b dot folds the input transpose),
    # lane-dense [H, tb] with f32 accumulation; Dropout == identity (eval).
    h1 = lax.dot_general(w1_ref[...], x, dimension_numbers=_TRANS_B_DIMS,
                         preferred_element_type=jnp.float32)
    h1 = jnp.maximum(h1 + b1_ref[...], 0.0)             # [H, tb] f32

    # Layer 2:  W2 @ h1 + b2, ReLU.
    h2 = jnp.dot(w2_ref[...], h1.astype(cd), preferred_element_type=jnp.float32)
    h2 = jnp.maximum(h2 + b2_ref[...], 0.0)             # [H, tb] f32

    # Layer 3:  output projection back to num_inputs.
    o = jnp.dot(w3_ref[...], h2.astype(cd),
                preferred_element_type=jnp.float32) + b3_ref[...]   # [I, tb] f32

    # Transpose back to the natural [tb, I] layout just before the store
    # (16-lane masked stores are far cheaper than a second HBM round trip).
    o_ref[...] = o.T.astype(o_ref.dtype)


def pack_params(params, compute_dtype=jnp.bfloat16):
    """One-time packing: keep PyTorch [out, in] weight layout (used directly by
    the kernel), cast weights to the MXU compute dtype (pass jnp.float32 for a
    bit-closer-to-PyTorch f32 path), and reshape biases to [out, 1] f32 columns
    (added to the f32 accumulator)."""
    return {
        "w1": params["w1"].astype(compute_dtype),            # [H, I]
        "b1": params["b1"].astype(jnp.float32)[:, None],     # [H, 1]
        "w2": params["w2"].astype(compute_dtype),            # [H, H]
        "b2": params["b2"].astype(jnp.float32)[:, None],     # [H, 1]
        "w3": params["w3"].astype(compute_dtype),            # [I, H]
        "b3": params["b3"].astype(jnp.float32)[:, None],     # [I, 1]
    }


def amplitude_mlp(x, packed, *, block_b=4096, out_dtype=jnp.float32):
    """x: [..., num_inputs] float32.  packed: output of pack_params().
    out_dtype=jnp.bfloat16 halves output HBM writeback if the consumer allows it."""
    num_hidden, num_inputs = packed["w1"].shape
    orig_shape = x.shape
    x2 = x.reshape(-1, num_inputs)
    B = x2.shape[0]

    # Tile sizing: batch groups of 128 (lane width of the in-kernel lane-dense
    # interior).  Pick the number of tiles first so padding waste is < ~1 group
    # per tile instead of up to a whole tile, and keep >= 2 grid steps whenever
    # possible so both v7x TensorCores get work ("parallel" axis below).
    LANE = 128
    nb = pl.cdiv(B, LANE)                 # number of 128-row groups
    b_pad0 = nb * LANE
    num_tiles = pl.cdiv(b_pad0, block_b)
    if nb >= 2:
        num_tiles = max(num_tiles, 2)
    tb = LANE * pl.cdiv(nb, num_tiles)    # tile: multiple of 128, <= round_up(B,128)
    num_tiles = pl.cdiv(b_pad0, tb)
    b_pad = tb * num_tiles

    # Only wrapper pass left: zero-pad the batch when it is ragged w.r.t. the
    # tile (no transpose, no dtype cast).  Zero-copy when B % tb == 0.
    if b_pad != B:
        x2 = jnp.pad(x2, ((0, b_pad - B), (0, 0)))

    out = pl.pallas_call(
        _amlp_kernel,
        out_shape=jax.ShapeDtypeStruct((b_pad, num_inputs), out_dtype),
        grid_spec=pltpu.PrefetchScalarGridSpec(
            num_scalar_prefetch=0,
            grid=(num_tiles,),
            in_specs=[
                # Natural [B, I] input, batch blocked along the grid.
                pl.BlockSpec((tb, num_inputs), lambda i: (i, 0)),
                # Weights / biases: constant index_maps -> DMA'd once, resident.
                pl.BlockSpec((num_hidden, num_inputs), lambda i: (0, 0)),
                pl.BlockSpec((num_hidden, 1), lambda i: (0, 0)),
                pl.BlockSpec((num_hidden, num_hidden), lambda i: (0, 0)),
                pl.BlockSpec((num_hidden, 1), lambda i: (0, 0)),
                pl.BlockSpec((num_inputs, num_hidden), lambda i: (0, 0)),
                pl.BlockSpec((num_inputs, 1), lambda i: (0, 0)),
            ],
            out_specs=pl.BlockSpec((tb, num_inputs), lambda i: (i, 0)),
        ),
        compiler_params=pltpu.CompilerParams(
            # Independent batch tiles -> shard across TensorCores on v7x.
            dimension_semantics=("parallel",),
            # ~12 MiB at block_b=4096 (double-buffered lane-padded x/out tiles
            # + f32 intermediates): safe on v5e/v6e/v7x.
            vmem_limit_bytes=32 * 1024 * 1024,
        ),
    )(x2, packed["w1"], packed["b1"], packed["w2"], packed["b2"],
      packed["w3"], packed["b3"])

    if b_pad != B:
        out = out[:B]
    return out.reshape(orig_shape)


def init_params(key, num_inputs, num_hidden, dtype=jnp.float32):
    """Deterministic init mimicking nn.Linear default (uniform +/- 1/sqrt(fan_in))."""
    ks = jax.random.split(key, 6)

    def lin(kw, kb, fan_in, fan_out):
        bound = 1.0 / (fan_in ** 0.5)
        w = jax.random.uniform(kw, (fan_out, fan_in), dtype, -bound, bound)
        b = jax.random.uniform(kb, (fan_out,), dtype, -bound, bound)
        return w, b

    w1, b1 = lin(ks[0], ks[1], num_inputs, num_hidden)
    w2, b2 = lin(ks[2], ks[3], num_hidden, num_hidden)
    w3, b3 = lin(ks[4], ks[5], num_hidden, num_inputs)
    return {"w1": w1, "b1": b1, "w2": w2, "b2": b2, "w3": w3, "b3": b3}


def _reference_f32(x, p):
    """Pure-f32 JAX reference of the PyTorch forward (eval mode)."""
    h = jnp.maximum(x @ p["w1"].T + p["b1"], 0.0)
    h = jnp.maximum(h @ p["w2"].T + p["b2"], 0.0)
    return h @ p["w3"].T + p["b3"]


def _reference_mixed(x, p):
    """Reference mirroring the kernel's bf16-operand / f32-accumulate math."""
    cd = jnp.bfloat16
    xT = x.T.astype(cd)
    h1 = jnp.maximum(
        jnp.dot(p["w1"].astype(cd), xT, preferred_element_type=jnp.float32)
        + p["b1"][:, None], 0.0)
    h2 = jnp.maximum(
        jnp.dot(p["w2"].astype(cd), h1.astype(cd),
                preferred_element_type=jnp.float32) + p["b2"][:, None], 0.0)
    o = jnp.dot(p["w3"].astype(cd), h2.astype(cd),
                preferred_element_type=jnp.float32) + p["b3"][:, None]
    return o.T


if __name__ == "__main__":
    key = jax.random.PRNGKey(0)
    k_param, k_x = jax.random.split(key)

    # Small shapes consistent with the module; B deliberately not a multiple of
    # 128 to exercise the padded ragged-tail path and a 2-step grid.
    B, num_inputs, num_hidden = 300, 16, 32
    params = init_params(k_param, num_inputs, num_hidden)
    packed = pack_params(params)
    x = jax.random.normal(k_x, (B, num_inputs), dtype=jnp.float32)

    out = amplitude_mlp(x, packed)            # default block_b; 2 tiles of 256
    out = jax.block_until_ready(out)
    assert out.shape == (B, num_inputs)

    ref_mixed = _reference_mixed(x, params)   # same bf16/f32 mixed precision
    ref_f32 = _reference_f32(x, params)       # pure f32 PyTorch semantics
    assert jnp.allclose(out, ref_mixed, atol=1e-3, rtol=1e-3), \
        "mismatch vs mixed-precision reference"
    assert jnp.allclose(out, ref_f32, atol=1e-1, rtol=1e-1), \
        "mismatch vs f32 reference"

    # Second config: B an exact multiple of the tile (zero-copy wrapper path,
    # multi-step grid with a small explicit block).
    B2 = 256
    x2 = jax.random.normal(k_x, (B2, num_inputs), dtype=jnp.float32)
    out2 = jax.block_until_ready(amplitude_mlp(x2, packed, block_b=128))
    assert out2.shape == (B2, num_inputs)
    assert jnp.allclose(out2, _reference_mixed(x2, params), atol=1e-3, rtol=1e-3)

    print("KERNEL_OK")
</pallas_src>

<mosaic_0001>
module attributes {stable_mosaic.version = 11 : i64} {
  func.func @_amlp_kernel(%arg0: i32, %arg1: memref<256x16xf32, #tpu.memory_space<vmem>>, %arg2: memref<32x16xbf16, #tpu.memory_space<vmem>>, %arg3: memref<32x1xf32, #tpu.memory_space<vmem>>, %arg4: memref<32x32xbf16, #tpu.memory_space<vmem>>, %arg5: memref<32x1xf32, #tpu.memory_space<vmem>>, %arg6: memref<16x32xbf16, #tpu.memory_space<vmem>>, %arg7: memref<16x1xf32, #tpu.memory_space<vmem>>, %arg8: memref<256x16xf32, #tpu.memory_space<vmem>>) attributes {dimension_semantics = [#tpu.dimension_semantics<parallel>], iteration_bounds = array<i64: 2>, scalar_prefetch = 0 : i64, scratch_operands = 0 : i64, tpu.core_type = #tpu.core_type<tc>, window_params = [{transform_indices = @transform_0, window_bounds = array<i64: 256, 16>}, {pipeline_mode = #tpu.pipeline_mode<synchronous>, transform_indices = @transform_1, window_bounds = array<i64: 32, 16>}, {pipeline_mode = #tpu.pipeline_mode<synchronous>, transform_indices = @transform_2, window_bounds = array<i64: 32, 1>}, {pipeline_mode = #tpu.pipeline_mode<synchronous>, transform_indices = @transform_3, window_bounds = array<i64: 32, 32>}, {pipeline_mode = #tpu.pipeline_mode<synchronous>, transform_indices = @transform_4, window_bounds = array<i64: 32, 1>}, {pipeline_mode = #tpu.pipeline_mode<synchronous>, transform_indices = @transform_5, window_bounds = array<i64: 16, 32>}, {pipeline_mode = #tpu.pipeline_mode<synchronous>, transform_indices = @transform_6, window_bounds = array<i64: 16, 1>}, {transform_indices = @transform_7, window_bounds = array<i64: 256, 16>}]} {
    %c0 = arith.constant 0 : index
    %c0_0 = arith.constant 0 : index
    %0 = vector.load %arg1[%c0, %c0_0] : memref<256x16xf32, #tpu.memory_space<vmem>>, vector<256x16xf32>
    %1 = arith.truncf %0 : vector<256x16xf32> to vector<256x16xbf16>
    %c0_1 = arith.constant 0 : index
    %c0_2 = arith.constant 0 : index
    %2 = vector.load %arg2[%c0_1, %c0_2] : memref<32x16xbf16, #tpu.memory_space<vmem>>, vector<32x16xbf16>
    %cst = arith.constant dense<0.000000e+00> : vector<32x256xf32>
    %3 = tpu.matmul %2, %1, %cst {dimension_numbers = #tpu.dot_dimension_numbers<[1], [1], [0], [0], [0, 0, 1, 0], [], []>} : vector<32x16xbf16>, vector<256x16xbf16>, vector<32x256xf32> -> vector<32x256xf32>
    %c0_3 = arith.constant 0 : index
    %c0_4 = arith.constant 0 : index
    %4 = vector.load %arg3[%c0_3, %c0_4] : memref<32x1xf32, #tpu.memory_space<vmem>>, vector<32x1xf32>
    %5 = vector.broadcast %4 : vector<32x1xf32> to vector<32x256xf32>
    %6 = arith.addf %3, %5 : vector<32x256xf32>
    %cst_5 = arith.constant 0.000000e+00 : f32
    %7 = vector.broadcast %cst_5 : f32 to vector<32x256xf32>
    %8 = arith.maximumf %6, %7 : vector<32x256xf32>
    %c0_6 = arith.constant 0 : index
    %c0_7 = arith.constant 0 : index
    %9 = vector.load %arg4[%c0_6, %c0_7] : memref<32x32xbf16, #tpu.memory_space<vmem>>, vector<32x32xbf16>
    %10 = arith.truncf %8 : vector<32x256xf32> to vector<32x256xbf16>
    %cst_8 = arith.constant dense<0.000000e+00> : vector<32x256xf32>
    %11 = tpu.matmul %9, %10, %cst_8 {dimension_numbers = #tpu.dot_dimension_numbers<[1], [0], [0], [1], [0, 0, 1, 1], [], []>} : vector<32x32xbf16>, vector<32x256xbf16>, vector<32x256xf32> -> vector<32x256xf32>
    %c0_9 = arith.constant 0 : index
    %c0_10 = arith.constant 0 : index
    %12 = vector.load %arg5[%c0_9, %c0_10] : memref<32x1xf32, #tpu.memory_space<vmem>>, vector<32x1xf32>
    %13 = vector.broadcast %12 : vector<32x1xf32> to vector<32x256xf32>
    %14 = arith.addf %11, %13 : vector<32x256xf32>
    %cst_11 = arith.constant 0.000000e+00 : f32
    %15 = vector.broadcast %cst_11 : f32 to vector<32x256xf32>
    %16 = arith.maximumf %14, %15 : vector<32x256xf32>
    %c0_12 = arith.constant 0 : index
    %c0_13 = arith.constant 0 : index
    %17 = vector.load %arg6[%c0_12, %c0_13] : memref<16x32xbf16, #tpu.memory_space<vmem>>, vector<16x32xbf16>
    %18 = arith.truncf %16 : vector<32x256xf32> to vector<32x256xbf16>
    %cst_14 = arith.constant dense<0.000000e+00> : vector<16x256xf32>
    %19 = tpu.matmul %17, %18, %cst_14 {dimension_numbers = #tpu.dot_dimension_numbers<[1], [0], [0], [1], [0, 0, 1, 1], [], []>} : vector<16x32xbf16>, vector<32x256xbf16>, vector<16x256xf32> -> vector<16x256xf32>
    %c0_15 = arith.constant 0 : index
    %c0_16 = arith.constant 0 : index
    %20 = vector.load %arg7[%c0_15, %c0_16] : memref<16x1xf32, #tpu.memory_space<vmem>>, vector<16x1xf32>
    %21 = vector.broadcast %20 : vector<16x1xf32> to vector<16x256xf32>
    %22 = arith.addf %19, %21 : vector<16x256xf32>
    %23 = tpu.transpose %22, [1, 0] : vector<16x256xf32> -> vector<256x16xf32>
    %c0_17 = arith.constant 0 : index
    %c0_18 = arith.constant 0 : index
    %24 = vector.load %arg8[%c0_17, %c0_18] : memref<256x16xf32, #tpu.memory_space<vmem>>, vector<256x16xf32>
    tpu.vector_store %arg8[%c0_17, %c0_18], %23 {strides = array<i32>} : memref<256x16xf32, #tpu.memory_space<vmem>>, vector<256x16xf32>,
    return
  }
  func.func @transform_0(%arg0: i32) -> (i32, i32) {
    %c0_i32 = arith.constant 0 : i32
    %c0_i32_0 = arith.constant 0 : i32
    return %arg0, %c0_i32 : i32, i32
  }
  func.func @transform_1(%arg0: i32) -> (i32, i32) {
    %c0_i32 = arith.constant 0 : i32
    %c0_i32_0 = arith.constant 0 : i32
    %c0_i32_1 = arith.constant 0 : i32
    return %c0_i32, %c0_i32_0 : i32, i32
  }
  func.func @transform_2(%arg0: i32) -> (i32, i32) {
    %c0_i32 = arith.constant 0 : i32
    %c0_i32_0 = arith.constant 0 : i32
    %c0_i32_1 = arith.constant 0 : i32
    return %c0_i32, %c0_i32_0 : i32, i32
  }
  func.func @transform_3(%arg0: i32) -> (i32, i32) {
    %c0_i32 = arith.constant 0 : i32
    %c0_i32_0 = arith.constant 0 : i32
    %c0_i32_1 = arith.constant 0 : i32
    return %c0_i32, %c0_i32_0 : i32, i32
  }
  func.func @transform_4(%arg0: i32) -> (i32, i32) {
    %c0_i32 = arith.constant 0 : i32
    %c0_i32_0 = arith.constant 0 : i32
    %c0_i32_1 = arith.constant 0 : i32
    return %c0_i32, %c0_i32_0 : i32, i32
  }
  func.func @transform_5(%arg0: i32) -> (i32, i32) {
    %c0_i32 = arith.constant 0 : i32
    %c0_i32_0 = arith.constant 0 : i32
    %c0_i32_1 = arith.constant 0 : i32
    return %c0_i32, %c0_i32_0 : i32, i32
  }
  func.func @transform_6(%arg0: i32) -> (i32, i32) {
    %c0_i32 = arith.constant 0 : i32
    %c0_i32_0 = arith.constant 0 : i32
    %c0_i32_1 = arith.constant 0 : i32
    return %c0_i32, %c0_i32_0 : i32, i32
  }
  func.func @transform_7(%arg0: i32) -> (i32, i32) {
    %c0_i32 = arith.constant 0 : i32
    %c0_i32_0 = arith.constant 0 : i32
    return %arg0, %c0_i32 : i32, i32
  }
}

</mosaic_0001>

<bundles_post_ra>
// kernel: tpu_custom_call.1
= control target key start
LH: loop header
LB: loop body
LE: loop exit
PB: predicated region body
PF: predicated region fallthrough
CT: control target
= control target key end

     0   :  { %s931_s24 = smov 0   ;;  %s1132_s0 = inlined_call_operand.vmem [shape: f32[512,16], index: 0, kind: input, shape index: {}]   ;;  %s1133_s1 = inlined_call_operand.vmem [shape: bf16[32,16], index: 1, kind: input, shape index: {}]   ;;  %s1134_s2 = inlined_call_operand.vmem [shape: f32[32,1], index: 2, kind: input, shape index: {}]   ;;  %s1135_s3 = inlined_call_operand.vmem [shape: bf16[32,32], index: 3, kind: input, shape index: {}]   ;;  %s1136_s4 = inlined_call_operand.vmem [shape: f32[32,1], index: 4, kind: input, shape index: {}]   ;;  %s1137_s5 = inlined_call_operand.vmem [shape: bf16[16,32], index: 5, kind: input, shape index: {}]   ;;  %s1138_s6 = inlined_call_operand.vmem [shape: f32[16,1], index: 6, kind: input, shape index: {}]   ;;  %s1139_s7 = inlined_call_operand.vmem [shape: f32[512,16], index: 7, kind: output, shape index: {}]  }
   0x1 LB: > { %s816_s25 = sadd.s32 4294967295, %s888_s24   ;;  %p820_p0 = scmp.ge.s32.totalorder %s888_s24, 1  ;;  %s888_s24 = sphi %s931_s24, %s17_s24  }
   0x2   : > { %p238_p1 = scmp.lt.s32.totalorder %s888_s24, 3 }
   0x4   : > { %p239_p2 = pnand %p820_p0, %p238_p1 }
   0x5   : > { %s821_s26 = sshll.u32 (!%p239_p2), %s816_s25, 5  ;;  %v942_v0 = vld [vmem:[%s1133_s1] sm:$0xff] (!%p239_p2)   ;;  %vm369_vm0 = vcmask (!%p239_p2), 130048   ;;  %v337_v2 = vld [vmem:[%s1134_s2 + $0x10] sm:$0xff] (!%p239_p2)  ;;  %v890_v3 = vmov (!%p239_p2), 0   ;;  %v336_v4 = vld [vmem:[%s1134_s2 + $0x8] sm:$0xff] (!%p239_p2) }
   0x6   : > { %242 = sbr.rel (%p239_p2) target bundleno = 955 (0x3bb), region = 48  ;;  %p271_p3 = scmp.lt.s32.totalorder (!%p239_p2), %s821_s26, 63  ;;  %v335_v1 = vld [vmem:[%s1134_s2] sm:$0xff] (!%p239_p2)  ;;  %853 = vmatprep.mubr.msk.bf16.mxu0 (!%p239_p2), %vm369_vm0, %v942_v0  ;;  %875 = vset.pattern.permute.xlu0 (!%p239_p2), %v890_v3  ;;  %v338_v5 = vld [vmem:[%s1134_s2 + $0x18] sm:$0xff] (!%p239_p2)  ;;  %v494_v18 = vld [vmem:[%s1136_s4 + $0x8] sm:$0xff] (!%p239_p2)  ;;  %vm527_vm1 = vcmask (!%p239_p2), 261120  }
   0x7   : > { %341 = vperm.xlu0 (!%p239_p2), %875, %v335_v1   ;;  %876 = vset.pattern.permute.xlu1 (!%p239_p2), %v890_v3  ;;  %v493_v15 = vld [vmem:[%s1136_s4] sm:$0xff] (!%p239_p2)  ;;  %v495_v21 = vld [vmem:[%s1136_s4 + $0x10] sm:$0xff] (!%p239_p2)  ;;  %v496_v24 = vld [vmem:[%s1136_s4 + $0x18] sm:$0xff] (!%p239_p2) }
   0x8   : > { %351 = vperm.xlu1 (!%p239_p2), %876, %v337_v2   ;;  %566 = vmatprep.mubr.bf16.mxu1 (!%p239_p2), %v890_v3  ;;  %v601_v27 = vld [vmem:[%s1138_s6] sm:$0xff] (!%p239_p2)  ;;  %v602_v28 = vld [vmem:[%s1138_s6 + $0x8] sm:$0xff] (!%p239_p2) }
   0xb   : > { %346 = vperm.xlu0 (!%p239_p2), %875, %v336_v4  }
   0xc   : > { %356 = vperm.xlu1 (!%p239_p2), %876, %v338_v5  }
   0xd   : > { %s1141_s26 = smov (!%p271_p3, %s821_s26), 63 }
   0xe   : > { %s822_s10 = sshll.u32 %s1141_s26, 3 }
   0xf   : > { %s969_s17 = scalar_lea.vmem %s1132_s0, %s822_s10  ;;  %499 = vperm.xlu0 %875, %v493_v15   ;;  %s1063_s20 = scalar_lea.vmem %s1139_s7, %s822_s10 }
  0x10   : > { %v299_v6 = vld [vmem:[%s969_s17 + $0x80] sm:$0xff]  ;;  %v300_v7 = vld [vmem:[%s969_s17 + $0x88] sm:$0xff]  ;;  %v301_v11 = vld [vmem:[%s969_s17 + $0x90] sm:$0xff]  ;;  %504 = vperm.xlu1 %876, %v494_v18  }
  0x11   : > { %v283_v8 = vld [vmem:[%s969_s17] sm:$0xff]  ;;  %v323_v9 = vpack.c.bf16 %v300_v7, %v299_v6  ;;  %v284_v10 = vld [vmem:[%s969_s17 + $0x8] sm:$0xff]  ;;  %v302_v12 = vld [vmem:[%s969_s17 + $0x98] sm:$0xff] }
  0x12   : > { %v315_v13 = vpack.c.bf16 %v284_v10, %v283_v8  ;;  %v324_v14 = vpack.c.bf16 %v302_v12, %v301_v11  ;;  %v285_v16 = vld [vmem:[%s969_s17 + $0x10] sm:$0xff]  ;;  %v286_v17 = vld [vmem:[%s969_s17 + $0x18] sm:$0xff]  ;;  %v303_v22 = vld [vmem:[%s969_s17 + $0xa0] sm:$0xff] }
  0x13   : > { %857 = vmatprep.subr.msk.bf16.mxu0 %vm369_vm0, %v323_v9  ;;  %v316_v20 = vpack.c.bf16 %v286_v17, %v285_v16  ;;  %v304_v23 = vld [vmem:[%s969_s17 + $0xa8] sm:$0xff]  ;;  %509 = vperm.xlu0 %875, %v495_v21   ;;  %v287_v29 = vld [vmem:[%s969_s17 + $0x20] sm:$0xff]  ;;  %v305_v32 = vld [vmem:[%s969_s17 + $0xb0] sm:$0xff] }
  0x14   : > { %v377_v19 = vsel %vm369_vm0, %v315_v13, 0  ;;  %v325_v26 = vpack.c.bf16 %v304_v23, %v303_v22  ;;  %514 = vperm.xlu1 %876, %v496_v24   ;;  %v288_v30 = vld [vmem:[%s969_s17 + $0x28] sm:$0xff]  ;;  %v306_v33 = vld [vmem:[%s969_s17 + $0xb8] sm:$0xff]  ;;  %v289_v36 = vld [vmem:[%s969_s17 + $0x30] sm:$0xff] }
  0x15   : > { %838 = vmatpush3.bf16.xpose.msra.mxu0 %v377_v19  ;;  %v380_v25 = vsel %vm369_vm0, %v316_v20, 0  ;;  %v317_v31 = vpack.c.bf16 %v288_v30, %v287_v29  ;;  %v326_v35 = vpack.c.bf16 %v306_v33, %v305_v32  ;;  %v290_v37 = vld [vmem:[%s969_s17 + $0x38] sm:$0xff]  ;;  %v307_v39 = vld [vmem:[%s969_s17 + $0xc0] sm:$0xff]  ;;  %v308_v40 = vld [vmem:[%s969_s17 + $0xc8] sm:$0xff] }
  0x16   : > { %858 = vmatprep.subr.msk.bf16.mxu0 %vm369_vm0, %v324_v14  ;;  %v318_v38 = vpack.c.bf16 %v290_v37, %v289_v36  ;;  %v327_v42 = vpack.c.bf16 %v308_v40, %v307_v39  ;;  %v291_v43 = vld [vmem:[%s969_s17 + $0x40] sm:$0xff]  ;;  %v292_v44 = vld [vmem:[%s969_s17 + $0x48] sm:$0xff]  ;;  %v309_v46 = vld [vmem:[%s969_s17 + $0xd0] sm:$0xff] }
  0x17   : > { %605 = vperm.xlu0 %875, %v601_v27   ;;  %v383_v34 = vsel %vm369_vm0, %v317_v31, 0  ;;  %v319_v45 = vpack.c.bf16 %v292_v44, %v291_v43  ;;  %v310_v47 = vld [vmem:[%s969_s17 + $0xd8] sm:$0xff]  ;;  %v293_v50 = vld [vmem:[%s969_s17 + $0x50] sm:$0xff]  ;;  %v311_v53 = vld [vmem:[%s969_s17 + $0xe0] sm:$0xff] }
  0x18   : > { %610 = vperm.xlu1 %876, %v602_v28   ;;  %v386_v41 = vsel %vm369_vm0, %v318_v38, 0  ;;  %v328_v49 = vpack.c.bf16 %v310_v47, %v309_v46  ;;  %v294_v51 = vld [vmem:[%s969_s17 + $0x58] sm:$0xff]  ;;  %v312_v54 = vld [vmem:[%s969_s17 + $0xe8] sm:$0xff]  ;;  %v295_v57 = vld [vmem:[%s969_s17 + $0x60] sm:$0xff] }
  0x19   : > { %v389_v48 = vsel %vm369_vm0, %v319_v45, 0  ;;  %v320_v52 = vpack.c.bf16 %v294_v51, %v293_v50  ;;  %v329_v56 = vpack.c.bf16 %v312_v54, %v311_v53  ;;  %v296_v58 = vld [vmem:[%s969_s17 + $0x68] sm:$0xff]  ;;  %v313_v60 = vld [vmem:[%s969_s17 + $0xf0] sm:$0xff]  ;;  %v314_v61 = vld [vmem:[%s969_s17 + $0xf8] sm:$0xff] }
  0x1a   : > { %v321_v59 = vpack.c.bf16 %v296_v58, %v295_v57  ;;  %v330_v63 = vpack.c.bf16 %v314_v61, %v313_v60  ;;  %v297_v1 = vld [vmem:[%s969_s17 + $0x70] sm:$0xff]  ;;  %v298_v2 = vld [vmem:[%s969_s17 + $0x78] sm:$0xff]  ;;  %v878_v6 = vld [vmem:[%s1133_s1 + $0x8] sm:$0xff]  }
  0x1b   : > { %v392_v55 = vsel %vm369_vm0, %v320_v52, 0  ;;  %v322_v4 = vpack.c.bf16 %v298_v2, %v297_v1  ;;  %v879_v38 = vld [vmem:[%s1135_s3] sm:$0xff]   ;;  %v880_v39 = vld [vmem:[%s1135_s3 + $0x8] sm:$0xff]  }
  0x1c   : > { %v395_v62 = vsel %vm369_vm0, %v321_v59, 0 }
  0x1d   : > { %840 = vmatpush3.bf16.xpose.msra.mxu0 %v380_v25  ;;  %v398_v5 = vsel %vm369_vm0, %v322_v4, 0 }
  0x1e   : > { %859 = vmatprep.subr.msk.bf16.mxu0 %vm369_vm0, %v325_v26 }
  0x25   : > { %842 = vmatpush3.bf16.xpose.msra.mxu0 %v383_v34 }
  0x26   : > { %860 = vmatprep.subr.msk.bf16.mxu0 %vm369_vm0, %v326_v35 }
  0x2d   : > { %844 = vmatpush3.bf16.xpose.msra.mxu0 %v386_v41 }
  0x2e   : > { %861 = vmatprep.subr.msk.bf16.mxu0 %vm369_vm0, %v327_v42 }
  0x35   : > { %846 = vmatpush3.bf16.xpose.msra.mxu0 %v389_v48 }
  0x36   : > { %862 = vmatprep.subr.msk.bf16.mxu0 %vm369_vm0, %v328_v49 }
  0x3d   : > { %848 = vmatpush3.bf16.xpose.msra.mxu0 %v392_v55 }
  0x3e   : > { %863 = vmatprep.subr.msk.bf16.mxu0 %vm369_vm0, %v329_v56 }
  0x45   : > { %850 = vmatpush3.bf16.xpose.msra.mxu0 %v395_v62 }
  0x46   : > { %864 = vmatprep.subr.msk.bf16.mxu0 %vm369_vm0, %v330_v63 }
  0x4d   : > { %852 = vmatpush3.bf16.xpose.msra.mxu0 %v398_v5 }
  0x54   : > { %854 = vmatmul.mubr.msk.bf16.vlgmr.msra.gmra.mrb[0].mxu0 %vm369_vm0, %v942_v0 }
  0x55   : > { %855 = vmatprep.mubr.msk.bf16.mxu0 %vm369_vm0, %v878_v6 }
  0x5c   : > { %856 = vmatmul.mubr.msk.bf16.gmra.mrb[4].mxu0 %vm369_vm0, %v878_v6 }
  0x86   : > { %v342_v7 = vpop.permute.xlu0 %341 }
  0x87   : > { %v352_v16 = vpop.permute.xlu1 %351 }
  0x8a   : > { %v347_v11 = vpop.permute.xlu0 %346 }
  0x8b   : > { %v357_v26 = vpop.permute.xlu1 %356 }
  0x8e   : > { %v500_v40 = vpop.permute.xlu0 %499 }
  0x8f   : > { %v505_v44 = vpop.permute.xlu1 %504 }
  0x92   : > { %v510_v55 = vpop.permute.xlu0 %509 }
  0x93   : > { %v515_v59 = vpop.permute.xlu1 %514 }
 0x127   : > { %v458_v8 = vpop.f32.mrb[0].mxu0 }
 0x128   : > { %v459_v9 = vadd.f32 %v458_v8, %v342_v7  ;;  %v460_v10 = vpop.f32.mrb[1].mxu0 }
 0x129   : > { %v461_v12 = vadd.f32 %v460_v10, %v342_v7  ;;  %v462_v13 = vpop.f32.mrb[2].mxu0  ;;  %v606_v10 = vpop.permute.xlu0 %605 }
 0x12a   : > { %v463_v14 = vadd.f32 %v462_v13, %v347_v11  ;;  %v464_v15 = vpop.f32.mrb[3].mxu0  ;;  %v477_v18 = vmax.f32 %v459_v9, 0.0  ;;  %v881_v9 = vld [vmem:[%s1137_s5] sm:$0xff]  }
 0x12b   : > { %v465_v17 = vadd.f32 %v464_v15, %v347_v11  ;;  %v478_v20 = vmax.f32 %v461_v12, 0.0 }
 0x12c   : > { %v479_v19 = vmax.f32 %v463_v14, 0.0 }
 0x12d   : > { %v480_v21 = vmax.f32 %v465_v17, 0.0  ;;  %v611_v17 = vpop.permute.xlu1 %610 }
 0x12e   : > { %v489_v0 = vpack.c.bf16 %v479_v19, %v477_v18 }
 0x12f   : > { %v468_v22 = vpop.f32.mrb[4].mxu0  ;;  %v490_v23 = vpack.c.bf16 %v480_v21, %v478_v20 }
 0x130   : > { %v469_v24 = vadd.f32 %v468_v22, %v352_v16  ;;  %v470_v25 = vpop.f32.mrb[5].mxu0 }
 0x131   : > { %v471_v27 = vadd.f32 %v470_v25, %v352_v16  ;;  %v472_v28 = vpop.f32.mrb[6].mxu0  ;;  %534 = vmatprep.subr.bf16.mxu1 %v490_v23 }
 0x132   : > { %v473_v29 = vadd.f32 %v472_v28, %v357_v26  ;;  %v474_v30 = vpop.f32.mrb[7].mxu0  ;;  %535 = vmatpush1.bf16.msra.mxu1 %v489_v0  ;;  %v481_v32 = vmax.f32 %v469_v24, 0.0 }
 0x133   : > { %v475_v31 = vadd.f32 %v474_v30, %v357_v26  ;;  %v482_v34 = vmax.f32 %v471_v27, 0.0 }
 0x134   : > { %v483_v33 = vmax.f32 %v473_v29, 0.0 }
 0x135   : > { %v484_v35 = vmax.f32 %v475_v31, 0.0 }
 0x136   : > { %v491_v36 = vpack.c.bf16 %v483_v33, %v481_v32 }
 0x137   : > { %v492_v37 = vpack.c.bf16 %v484_v35, %v482_v34 }
 0x139   : > { %536 = vmatprep.subr.bf16.mxu1 %v492_v37 }
 0x13a   : > { %537 = vmatpush1.bf16.msra.mxu1 %v491_v36 }
 0x13d   : > { %831 = vmatmul.mubr.msk.bf16.vlgmr.msra.gmra.mrb[0].mxu1 %vm527_vm1, %v879_v38 }
 0x13e   : > { %576 = vmatprep.mubr.bf16.mxu1 %v890_v3 }
 0x145   : > { %832 = vmatmul.mubr.msk.bf16.gmra.mrb[4].mxu1 %vm527_vm1, %v880_v39 }
 0x146   : > { %653 = vmatprep.mubr.bf16.mxu1 %v890_v3 }
 0x210   : > { %v568_v41 = vpop.f32.mrb[0].mxu1 }
 0x211   : > { %v569_v42 = vadd.f32 %v568_v41, %v500_v40  ;;  %v570_v43 = vpop.f32.mrb[1].mxu1 }
 0x212   : > { %v571_v45 = vadd.f32 %v570_v43, %v500_v40  ;;  %v572_v46 = vpop.f32.mrb[2].mxu1 }
 0x213   : > { %v573_v47 = vadd.f32 %v572_v46, %v505_v44  ;;  %v574_v48 = vpop.f32.mrb[3].mxu1  ;;  %v587_v50 = vmax.f32 %v569_v42, 0.0 }
 0x214   : > { %v575_v49 = vadd.f32 %v574_v48, %v505_v44  ;;  %v588_v52 = vmax.f32 %v571_v45, 0.0 }
 0x215   : > { %v589_v51 = vmax.f32 %v573_v47, 0.0 }
 0x216   : > { %v590_v53 = vmax.f32 %v575_v49, 0.0 }
 0x217   : > { %v597_v54 = vpack.c.bf16 %v589_v51, %v587_v50 }
 0x218   : > { %v598_v56 = vpack.c.bf16 %v590_v53, %v588_v52  ;;  %v578_v57 = vpop.f32.mrb[4].mxu1 }
 0x219   : > { %v579_v58 = vadd.f32 %v578_v57, %v510_v55  ;;  %v580_v3 = vpop.f32.mrb[5].mxu1 }
 0x21a   : > { %v581_v60 = vadd.f32 %v580_v3, %v510_v55  ;;  %v582_v61 = vpop.f32.mrb[6].mxu1  ;;  %621 = vmatprep.subr.bf16.mxu1 %v598_v56 }
 0x21b   : > { %v583_v62 = vadd.f32 %v582_v61, %v515_v59  ;;  %v584_v63 = vpop.f32.mrb[7].mxu1  ;;  %622 = vmatpush1.bf16.msra.mxu1 %v597_v54  ;;  %v591_v2 = vmax.f32 %v579_v58, 0.0 }
 0x21c   : > { %v585_v1 = vadd.f32 %v584_v63, %v515_v59  ;;  %v592_v5 = vmax.f32 %v581_v60, 0.0 }
 0x21d   : > { %v593_v4 = vmax.f32 %v583_v62, 0.0 }
 0x21e   : > { %v594_v6 = vmax.f32 %v585_v1, 0.0 }
 0x21f   : > { %v599_v7 = vpack.c.bf16 %v593_v4, %v591_v2 }
 0x220   : > { %v600_v8 = vpack.c.bf16 %v594_v6, %v592_v5 }
 0x222   : > { %623 = vmatprep.subr.bf16.mxu1 %v600_v8 }
 0x223   : > { %624 = vmatpush1.bf16.msra.mxu1 %v599_v7 }
 0x226   : > { %834 = vmatmul.mubr.msk.bf16.vlgmr.msra.gmra.mrb[8].mxu1 %vm527_vm1, %v881_v9 }
 0x2f9   : > { %v655_v11 = vpop.f32.mrb[8].mxu1 }
 0x2fa   : > { %v656_v12 = vadd.f32 %v655_v11, %v606_v10  ;;  %v657_v13 = vpop.f32.mrb[9].mxu1 }
 0x2fb   : > { %v658_v14 = vadd.f32 %v657_v13, %v606_v10  ;;  %v659_v15 = vpop.f32.mrb[10].mxu1 }
 0x2fc   : > { %v661_v16 = vpop.f32.mrb[11].mxu1  ;;  %664 = vxpose.xlu0.b32.start [1/2] (short) %v656_v12, 128  ;;  %v660_v18 = vadd.f32 %v659_v15, %v611_v17 }
 0x2fd   : > { %696 = vxpose.xlu1.b32.start [1/2] (short) %v658_v14, 128  ;;  %v662_v19 = vadd.f32 %v661_v16, %v611_v17 }
 0x300   : > { %665 = vxpose.xlu0.b32.end [2/2] (short) %v660_v18, 128 }
 0x301   : > { %697 = vxpose.xlu1.b32.end [2/2] (short) %v662_v19, 128 }
 0x37c   : > { %v680_v20 = vpop.trf.xlu0 }
 0x37d   : > { %v712_v21 = vpop.trf.xlu1  ;;  %728 = vst.msk [vmem:[%s1063_s20] sm:$0xff] %vm369_vm0, %v680_v20 }
 0x37e   : > { %744 = vst.msk [vmem:[%s1063_s20 + $0x80] sm:$0xff] %vm369_vm0, %v712_v21 }
 0x380   : > { %v681_v0 = vpop.trf.xlu0 }
 0x381   : > { %v713_v22 = vpop.trf.xlu1  ;;  %729 = vst.msk [vmem:[%s1063_s20 + $0x8] sm:$0xff] %vm369_vm0, %v681_v0 }
 0x382   : > { %745 = vst.msk [vmem:[%s1063_s20 + $0x88] sm:$0xff] %vm369_vm0, %v713_v22 }
 0x384   : > { %v682_v23 = vpop.trf.xlu0 }
 0x385   : > { %v714_v24 = vpop.trf.xlu1  ;;  %730 = vst.msk [vmem:[%s1063_s20 + $0x10] sm:$0xff] %vm369_vm0, %v682_v23 }
 0x386   : > { %746 = vst.msk [vmem:[%s1063_s20 + $0x90] sm:$0xff] %vm369_vm0, %v714_v24 }
 0x388   : > { %v683_v25 = vpop.trf.xlu0 }
 0x389   : > { %v715_v26 = vpop.trf.xlu1  ;;  %731 = vst.msk [vmem:[%s1063_s20 + $0x18] sm:$0xff] %vm369_vm0, %v683_v25 }
 0x38a   : > { %747 = vst.msk [vmem:[%s1063_s20 + $0x98] sm:$0xff] %vm369_vm0, %v715_v26 }
 0x38c   : > { %v684_v27 = vpop.trf.xlu0 }
 0x38d   : > { %v716_v28 = vpop.trf.xlu1  ;;  %732 = vst.msk [vmem:[%s1063_s20 + $0x20] sm:$0xff] %vm369_vm0, %v684_v27 }
 0x38e   : > { %748 = vst.msk [vmem:[%s1063_s20 + $0xa0] sm:$0xff] %vm369_vm0, %v716_v28 }
 0x390   : > { %v685_v29 = vpop.trf.xlu0 }
 0x391   : > { %v717_v30 = vpop.trf.xlu1  ;;  %733 = vst.msk [vmem:[%s1063_s20 + $0x28] sm:$0xff] %vm369_vm0, %v685_v29 }
 0x392   : > { %749 = vst.msk [vmem:[%s1063_s20 + $0xa8] sm:$0xff] %vm369_vm0, %v717_v30 }
 0x394   : > { %v686_v31 = vpop.trf.xlu0 }
 0x395   : > { %v718_v32 = vpop.trf.xlu1  ;;  %734 = vst.msk [vmem:[%s1063_s20 + $0x30] sm:$0xff] %vm369_vm0, %v686_v31 }
 0x396   : > { %750 = vst.msk [vmem:[%s1063_s20 + $0xb0] sm:$0xff] %vm369_vm0, %v718_v32 }
 0x398   : > { %v687_v33 = vpop.trf.xlu0 }
 0x399   : > { %v719_v34 = vpop.trf.xlu1  ;;  %735 = vst.msk [vmem:[%s1063_s20 + $0x38] sm:$0xff] %vm369_vm0, %v687_v33 }
 0x39a   : > { %751 = vst.msk [vmem:[%s1063_s20 + $0xb8] sm:$0xff] %vm369_vm0, %v719_v34 }
 0x39c   : > { %v688_v35 = vpop.trf.xlu0 }
 0x39d   : > { %v720_v36 = vpop.trf.xlu1  ;;  %736 = vst.msk [vmem:[%s1063_s20 + $0x40] sm:$0xff] %vm369_vm0, %v688_v35 }
 0x39e   : > { %752 = vst.msk [vmem:[%s1063_s20 + $0xc0] sm:$0xff] %vm369_vm0, %v720_v36 }
 0x3a0   : > { %v689_v37 = vpop.trf.xlu0 }
 0x3a1   : > { %v721_v38 = vpop.trf.xlu1  ;;  %737 = vst.msk [vmem:[%s1063_s20 + $0x48] sm:$0xff] %vm369_vm0, %v689_v37 }
 0x3a2   : > { %753 = vst.msk [vmem:[%s1063_s20 + $0xc8] sm:$0xff] %vm369_vm0, %v721_v38 }
 0x3a4   : > { %v690_v39 = vpop.trf.xlu0 }
 0x3a5   : > { %v722_v40 = vpop.trf.xlu1  ;;  %738 = vst.msk [vmem:[%s1063_s20 + $0x50] sm:$0xff] %vm369_vm0, %v690_v39 }
 0x3a6   : > { %754 = vst.msk [vmem:[%s1063_s20 + $0xd0] sm:$0xff] %vm369_vm0, %v722_v40 }
 0x3a8   : > { %v691_v41 = vpop.trf.xlu0 }
 0x3a9   : > { %v723_v42 = vpop.trf.xlu1  ;;  %739 = vst.msk [vmem:[%s1063_s20 + $0x58] sm:$0xff] %vm369_vm0, %v691_v41 }
 0x3aa   : > { %755 = vst.msk [vmem:[%s1063_s20 + $0xd8] sm:$0xff] %vm369_vm0, %v723_v42 }
 0x3ac   : > { %v692_v43 = vpop.trf.xlu0 }
 0x3ad   : > { %v724_v44 = vpop.trf.xlu1  ;;  %740 = vst.msk [vmem:[%s1063_s20 + $0x60] sm:$0xff] %vm369_vm0, %v692_v43 }
 0x3ae   : > { %756 = vst.msk [vmem:[%s1063_s20 + $0xe0] sm:$0xff] %vm369_vm0, %v724_v44 }
 0x3b0   : > { %v693_v45 = vpop.trf.xlu0 }
 0x3b1   : > { %v725_v46 = vpop.trf.xlu1  ;;  %741 = vst.msk [vmem:[%s1063_s20 + $0x68] sm:$0xff] %vm369_vm0, %v693_v45 }
 0x3b2   : > { %757 = vst.msk [vmem:[%s1063_s20 + $0xe8] sm:$0xff] %vm369_vm0, %v725_v46 }
 0x3b4   : > { %v694_v47 = vpop.trf.xlu0 }
 0x3b5   : > { %v726_v48 = vpop.trf.xlu1  ;;  %742 = vst.msk [vmem:[%s1063_s20 + $0x70] sm:$0xff] %vm369_vm0, %v694_v47 }
 0x3b6   : > { %758 = vst.msk [vmem:[%s1063_s20 + $0xf0] sm:$0xff] %vm369_vm0, %v726_v48 }
 0x3b8   : > { %v695_v49 = vpop.trf.xlu0 }
 0x3b9   : > { %v727_v50 = vpop.trf.xlu1  ;;  %743 = vst.msk [vmem:[%s1063_s20 + $0x78] sm:$0xff] %vm369_vm0, %v695_v49 }
 0x3ba   : > { %759 = vst.msk [vmem:[%s1063_s20 + $0xf8] sm:$0xff] %vm369_vm0, %v727_v50 }
 0x3bb PF: > { %s17_s24 = sadd.s32 1, %s888_s24  }
 0x3bc   : > { %p14_p4 = scmp.ge.s32.totalorder %s17_s24, 4  }
 0x3be   :  { %16 = sbr.rel (!%p14_p4) target bundleno = 1 (0x1), region = 78 }

</bundles_post_ra>
